<compile_context>
chip_gen: v6e
topology: v6e:2x2x1
jax: 0.10.0
libtpu: 0.0.40
codegen_flags: <defaults>
</compile_context>

<pallas_src>
import functools

import jax
import jax.numpy as jnp
from jax import lax
from jax.experimental import pallas as pl
from jax.experimental.pallas import tpu as pltpu

_LANE = 128
_MAX_BLOCK_ROWS = 2048  # (2048,128) f32 tile = 1 MiB; 2 inputs x 2 buffers = 4 MiB


def _focal_loss_kernel(x_ref, t_ref, o_ref, acc_ref, *,
                       alpha, gamma, logits, n_elems, block_rows, nb_per_core):
    p = pl.program_id(0)   # parallel slice (maps to a TensorCore on v7x)
    j = pl.program_id(1)   # sequential reduction step within the slice

    @pl.when(j == 0)
    def _():
        acc_ref[...] = jnp.zeros_like(acc_ref)

    x = x_ref[...].astype(jnp.float32)
    t = t_ref[...].astype(jnp.float32)

    if logits:
        # binary_cross_entropy_with_logits (reduce=False), numerically stable:
        #   max(x, 0) - x*t + log(1 + exp(-|x|))
        bce = jnp.maximum(x, 0.0) - x * t + jnp.log1p(jnp.exp(-jnp.abs(x)))
    else:
        # binary_cross_entropy (reduce=False); PyTorch clamps log() at -100.
        log_p = jnp.maximum(jnp.log(x), -100.0)
        log_1mp = jnp.maximum(jnp.log(1.0 - x), -100.0)
        bce = -(t * log_p + (1.0 - t) * log_1mp)

    pt = jnp.exp(-bce)
    one_minus_pt = jnp.maximum(1.0 - pt, 0.0)   # guard tiny negatives from rounding
    g = float(gamma)
    if g == 2.0:
        mod = jnp.square(one_minus_pt)                 # VPU, avoids pow->exp/log on EUP
    elif g == int(g) and g >= 0.0:
        mod = lax.integer_pow(one_minus_pt, int(g))
    else:
        mod = one_minus_pt ** g
    f_loss = alpha * mod * bce

    # Mask everything past the real element count (tail pad + Pallas partial-block
    # padding + fully out-of-range clamped blocks) before accumulating.
    block_idx = p * nb_per_core + j                    # unclamped logical block id
    row_off = block_idx * block_rows
    rows_iota = lax.broadcasted_iota(jnp.int32, f_loss.shape, 0)
    lane_iota = lax.broadcasted_iota(jnp.int32, f_loss.shape, 1)
    flat_idx = (row_off + rows_iota) * _LANE + lane_iota
    f_loss = jnp.where(flat_idx < n_elems, f_loss, 0.0)

    # Vector (per-lane) partial sums; the lane reduce is deferred to the wrapper.
    acc_ref[...] += jnp.sum(f_loss, axis=0, keepdims=True)

    @pl.when(j == pl.num_programs(1) - 1)
    def _():
        o_ref[...] = acc_ref[...].reshape(o_ref.shape)


def focal_loss(inputs, targets, *, alpha=1.0, gamma=2.0, logits=False):
    """reduce=True focal loss; returns a scalar float32 (mean over all elements)."""
    assert inputs.shape == targets.shape
    n_elems = int(inputs.size)

    # Keep native dtype; the kernel upcasts per-tile (halves HBM traffic for bf16).
    x = inputs.reshape(-1)
    t = targets.reshape(-1)

    # Only pad the (<128 element) remainder so the lane-dense reshape is legal;
    # padded elements are masked inside the kernel, so the pad value is irrelevant.
    rem = n_elems % _LANE
    if rem:
        n_pad = _LANE - rem
        x = jnp.concatenate([x, jnp.ones((n_pad,), x.dtype)])
        t = jnp.concatenate([t, jnp.ones((n_pad,), t.dtype)])

    rows = x.size // _LANE
    x2 = x.reshape(rows, _LANE)
    t2 = t.reshape(rows, _LANE)

    # Large vreg-aligned row blocks (multiple of 8, or the full extent if tiny).
    if rows <= 8:
        block_rows = rows
    else:
        block_rows = max(8, (min(_MAX_BLOCK_ROWS, rows) // 8) * 8)
    nb_total = -(-rows // block_rows)

    # Split row-blocks across TensorCores on v7x; neutral on single-TC chips.
    n_par = 2 if nb_total >= 2 else 1
    nb_per_core = -(-nb_total // n_par)

    kernel = functools.partial(
        _focal_loss_kernel,
        alpha=float(alpha), gamma=float(gamma), logits=bool(logits),
        n_elems=n_elems, block_rows=block_rows, nb_per_core=nb_per_core)

    def in_map(p, j):
        # Clamp so the DMA never indexes past the last real block; the in-kernel
        # mask (built from the unclamped index) zeroes any duplicated data.
        return (jnp.minimum(p * nb_per_core + j, nb_total - 1), 0)

    bytes_in = x2.size * x2.dtype.itemsize + t2.size * t2.dtype.itemsize
    cost = pl.CostEstimate(
        flops=12 * n_elems,
        transcendentals=3 * n_elems,          # log/log/exp (or exp/log1p/exp)
        bytes_accessed=bytes_in + n_par * _LANE * 4)

    partial_sums = pl.pallas_call(
        kernel,
        out_shape=jax.ShapeDtypeStruct((n_par, 1, _LANE), jnp.float32),
        grid_spec=pltpu.PrefetchScalarGridSpec(
            num_scalar_prefetch=0,
            grid=(n_par, nb_per_core),
            in_specs=[
                pl.BlockSpec((block_rows, _LANE), in_map),
                pl.BlockSpec((block_rows, _LANE), in_map),
            ],
            out_specs=pl.BlockSpec((1, 1, _LANE), lambda p, j: (p, 0, 0)),
            scratch_shapes=[pltpu.VMEM((1, _LANE), jnp.float32)],
        ),
        compiler_params=pltpu.CompilerParams(
            dimension_semantics=("parallel", "arbitrary")),
        cost_estimate=cost,
    )(x2, t2)

    # Final cross-lane / cross-core reduce + mean scaling (tiny, done in XLA).
    return jnp.sum(partial_sums) * (1.0 / float(n_elems))
    # TODO(synk): reduce=False (per-element loss map output) path not implemented.


def _focal_loss_ref(inputs, targets, *, alpha=1.0, gamma=2.0, logits=False):
    x = inputs.astype(jnp.float32)
    t = targets.astype(jnp.float32)
    if logits:
        bce = jnp.maximum(x, 0.0) - x * t + jnp.log1p(jnp.exp(-jnp.abs(x)))
    else:
        bce = -(t * jnp.maximum(jnp.log(x), -100.0)
                + (1.0 - t) * jnp.maximum(jnp.log(1.0 - x), -100.0))
    pt = jnp.exp(-bce)
    return jnp.mean(alpha * (1.0 - pt) ** gamma * bce)


if __name__ == "__main__":
    key = jax.random.PRNGKey(0)
    k1, k2 = jax.random.split(key)
    B, C, H, W = 2, 4, 16, 16
    # logits=False path: inputs must be probabilities in (0, 1).
    inputs = jax.nn.sigmoid(jax.random.normal(k1, (B, C, H, W), jnp.float32))
    targets = jax.random.bernoulli(k2, 0.5, (B, C, H, W)).astype(jnp.float32)

    loss = focal_loss(inputs, targets, alpha=1.0, gamma=2.0, logits=False)
    loss = jax.block_until_ready(loss)

    ref = _focal_loss_ref(inputs, targets, alpha=1.0, gamma=2.0, logits=False)
    assert jnp.allclose(loss, ref, rtol=1e-5, atol=1e-6), (loss, ref)
    print("KERNEL_OK")
</pallas_src>

<mosaic_0001>
module attributes {stable_mosaic.version = 11 : i64} {
  func.func @_focal_loss_kernel(%arg0: i32, %arg1: i32, %arg2: memref<16x128xf32, #tpu.memory_space<vmem>>, %arg3: memref<16x128xf32, #tpu.memory_space<vmem>>, %arg4: memref<1x1x128xf32, #tpu.memory_space<vmem>>, %arg5: memref<1x128xf32, #tpu.memory_space<vmem>>) attributes {dimension_semantics = [#tpu.dimension_semantics<parallel>, #tpu.dimension_semantics<arbitrary>], iteration_bounds = array<i64: 1, 1>, scalar_prefetch = 0 : i64, scratch_operands = 1 : i64, tpu.core_type = #tpu.core_type<tc>, window_params = [{transform_indices = @transform_0, window_bounds = array<i64: 16, 128>}, {transform_indices = @transform_1, window_bounds = array<i64: 16, 128>}, {transform_indices = @transform_2, window_bounds = array<i64: 1, 1, 128>}]} {
    %c0_i32 = arith.constant 0 : i32
    %0 = arith.cmpi eq, %arg1, %c0_i32 : i32
    %1 = arith.extui %0 : i1 to i32
    %c0_i32_0 = arith.constant 0 : i32
    %2 = arith.cmpi ne, %1, %c0_i32_0 : i32
    scf.if %2 {
      %cst_20 = arith.constant 0.000000e+00 : f32
      %53 = vector.broadcast %cst_20 : f32 to vector<1x128xf32>
      %c0_21 = arith.constant 0 : index
      %c0_22 = arith.constant 0 : index
      %54 = vector.load %arg5[%c0_21, %c0_22] : memref<1x128xf32, #tpu.memory_space<vmem>>, vector<1x128xf32>
      tpu.vector_store %arg5[%c0_21, %c0_22], %53 {strides = array<i32>} : memref<1x128xf32, #tpu.memory_space<vmem>>, vector<1x128xf32>,
    } else {
    }
    %c0 = arith.constant 0 : index
    %c0_1 = arith.constant 0 : index
    %3 = vector.load %arg2[%c0, %c0_1] : memref<16x128xf32, #tpu.memory_space<vmem>>, vector<16x128xf32>
    %c0_2 = arith.constant 0 : index
    %c0_3 = arith.constant 0 : index
    %4 = vector.load %arg3[%c0_2, %c0_3] : memref<16x128xf32, #tpu.memory_space<vmem>>, vector<16x128xf32>
    %5 = math.log %3 : vector<16x128xf32>
    %cst = arith.constant -1.000000e+02 : f32
    %6 = vector.broadcast %cst : f32 to vector<16x128xf32>
    %7 = arith.maximumf %5, %6 : vector<16x128xf32>
    %cst_4 = arith.constant 1.000000e+00 : f32
    %8 = vector.broadcast %cst_4 : f32 to vector<16x128xf32>
    %9 = arith.subf %8, %3 : vector<16x128xf32>
    %10 = math.log %9 : vector<16x128xf32>
    %cst_5 = arith.constant -1.000000e+02 : f32
    %11 = vector.broadcast %cst_5 : f32 to vector<16x128xf32>
    %12 = arith.maximumf %10, %11 : vector<16x128xf32>
    %13 = arith.mulf %4, %7 : vector<16x128xf32>
    %cst_6 = arith.constant 1.000000e+00 : f32
    %14 = vector.broadcast %cst_6 : f32 to vector<16x128xf32>
    %15 = arith.subf %14, %4 : vector<16x128xf32>
    %16 = arith.mulf %15, %12 : vector<16x128xf32>
    %17 = arith.addf %13, %16 : vector<16x128xf32>
    %cst_7 = arith.constant 0.000000e+00 : f32
    %18 = vector.broadcast %cst_7 : f32 to vector<16x128xf32>
    %19 = arith.subf %18, %17 : vector<16x128xf32>
    %cst_8 = arith.constant 0.000000e+00 : f32
    %20 = vector.broadcast %cst_8 : f32 to vector<16x128xf32>
    %21 = arith.subf %20, %19 : vector<16x128xf32>
    %22 = math.exp %21 : vector<16x128xf32>
    %cst_9 = arith.constant 1.000000e+00 : f32
    %23 = vector.broadcast %cst_9 : f32 to vector<16x128xf32>
    %24 = arith.subf %23, %22 : vector<16x128xf32>
    %cst_10 = arith.constant 0.000000e+00 : f32
    %25 = vector.broadcast %cst_10 : f32 to vector<16x128xf32>
    %26 = arith.maximumf %24, %25 : vector<16x128xf32>
    %27 = arith.mulf %26, %26 : vector<16x128xf32>
    %cst_11 = arith.constant 1.000000e+00 : f32
    %28 = vector.broadcast %cst_11 : f32 to vector<16x128xf32>
    %29 = arith.mulf %28, %27 : vector<16x128xf32>
    %30 = arith.mulf %29, %19 : vector<16x128xf32>
    %c1_i32 = arith.constant 1 : i32
    %31 = arith.muli %arg0, %c1_i32 : i32
    %32 = arith.addi %31, %arg1 : i32
    %c16_i32 = arith.constant 16 : i32
    %33 = arith.muli %32, %c16_i32 : i32
    %34 = tpu.iota {dimensions = array<i32: 0>} : vector<16x128xi32>
    %35 = tpu.iota {dimensions = array<i32: 1>} : vector<16x128xi32>
    %36 = vector.broadcast %33 : i32 to vector<16x128xi32>
    %37 = arith.addi %36, %34 : vector<16x128xi32>
    %c128_i32 = arith.constant 128 : i32
    %38 = vector.broadcast %c128_i32 : i32 to vector<16x128xi32>
    %39 = arith.muli %37, %38 : vector<16x128xi32>
    %40 = arith.addi %39, %35 : vector<16x128xi32>
    %c2048_i32 = arith.constant 2048 : i32
    %41 = vector.broadcast %c2048_i32 : i32 to vector<16x128xi32>
    %42 = arith.cmpi slt, %40, %41 : vector<16x128xi32>
    %cst_12 = arith.constant 0.000000e+00 : f32
    %43 = vector.broadcast %cst_12 : f32 to vector<16x128xf32>
    %44 = arith.select %42, %30, %43 : vector<16x128xi1>, vector<16x128xf32>
    %c0_13 = arith.constant 0 : index
    %c0_14 = arith.constant 0 : index
    %45 = vector.load %arg5[%c0_13, %c0_14] : memref<1x128xf32, #tpu.memory_space<vmem>>, vector<1x128xf32>
    %cst_15 = arith.constant dense<0.000000e+00> : vector<128xf32>
    %46 = vector.multi_reduction <add>, %44, %cst_15 [0] : vector<16x128xf32> to vector<128xf32>
    %47 = vector.shape_cast %46 : vector<128xf32> to vector<1x128xf32>
    %48 = arith.addf %45, %47 : vector<1x128xf32>
    %c0_16 = arith.constant 0 : index
    %c0_17 = arith.constant 0 : index
    %49 = vector.load %arg5[%c0_16, %c0_17] : memref<1x128xf32, #tpu.memory_space<vmem>>, vector<1x128xf32>
    tpu.vector_store %arg5[%c0_16, %c0_17], %48 {strides = array<i32>} : memref<1x128xf32, #tpu.memory_space<vmem>>, vector<1x128xf32>,
    %c0_i32_18 = arith.constant 0 : i32
    %50 = arith.cmpi eq, %arg1, %c0_i32_18 : i32
    %51 = arith.extui %50 : i1 to i32
    %c0_i32_19 = arith.constant 0 : i32
    %52 = arith.cmpi ne, %51, %c0_i32_19 : i32
    scf.if %52 {
      %c0_20 = arith.constant 0 : index
      %c0_21 = arith.constant 0 : index
      %53 = vector.load %arg5[%c0_20, %c0_21] : memref<1x128xf32, #tpu.memory_space<vmem>>, vector<1x128xf32>
      %54 = vector.shape_cast %53 : vector<1x128xf32> to vector<1x1x128xf32>
      %c0_22 = arith.constant 0 : index
      %c0_23 = arith.constant 0 : index
      %c0_24 = arith.constant 0 : index
      %55 = vector.load %arg4[%c0_22, %c0_23, %c0_24] : memref<1x1x128xf32, #tpu.memory_space<vmem>>, vector<1x1x128xf32>
      tpu.vector_store %arg4[%c0_22, %c0_23, %c0_24], %54 {strides = array<i32>} : memref<1x1x128xf32, #tpu.memory_space<vmem>>, vector<1x1x128xf32>,
    } else {
    }
    return
  }
  func.func @transform_0(%arg0: i32, %arg1: i32) -> (i32, i32) {
    %c1_i32 = arith.constant 1 : i32
    %0 = arith.muli %arg0, %c1_i32 : i32
    %1 = arith.addi %0, %arg1 : i32
    %c0_i32 = arith.constant 0 : i32
    %2 = arith.minsi %1, %c0_i32 : i32
    %c0_i32_0 = arith.constant 0 : i32
    %c0_i32_1 = arith.constant 0 : i32
    return %2, %c0_i32_0 : i32, i32
  }
  func.func @transform_1(%arg0: i32, %arg1: i32) -> (i32, i32) {
    %c1_i32 = arith.constant 1 : i32
    %0 = arith.muli %arg0, %c1_i32 : i32
    %1 = arith.addi %0, %arg1 : i32
    %c0_i32 = arith.constant 0 : i32
    %2 = arith.minsi %1, %c0_i32 : i32
    %c0_i32_0 = arith.constant 0 : i32
    %c0_i32_1 = arith.constant 0 : i32
    return %2, %c0_i32_0 : i32, i32
  }
  func.func @transform_2(%arg0: i32, %arg1: i32) -> (i32, i32, i32) {
    %c0_i32 = arith.constant 0 : i32
    %c0_i32_0 = arith.constant 0 : i32
    %c0_i32_1 = arith.constant 0 : i32
    return %arg0, %c0_i32, %c0_i32_0 : i32, i32, i32
  }
}

</mosaic_0001>

<bundles_post_ra>
// kernel: tpu_custom_call.1
= control target key start
LH: loop header
LB: loop body
LE: loop exit
PB: predicated region body
PF: predicated region fallthrough
CT: control target
= control target key end

     0   :  { %7 = vsyncpa [#allocation4], 0  ;;  %s274_s0 = inlined_call_operand.hbm [shape: f32[16,128], index: 0, kind: input, shape index: {}]   ;;  %s275_s1 = inlined_call_operand.hbm [shape: f32[16,128], index: 1, kind: input, shape index: {}]   ;;  %s276_s2 = inlined_call_operand.hbm [shape: f32[1,1,128], index: 2, kind: output, shape index: {}]  }
   0x1   :  { %8 = vsyncpa [#allocation7], 0 }
   0x2   :  { %9 = vsyncpa [#allocation5], 0  ;;  %s244_s9 = smov [#allocation3]  }
   0x3   :  { %s21_s10 = sshll.u32 %s244_s9, 4  ;;  %s22_s10 = int_to_ptr.vmem [resolvable:$true] %s21_s10 }
   0x4   :  { %s186_s11 = scalar_lea.vmem %s22_s10, 256  ;;  %p191_p1 = scmp.lt.s32.totalorder %s22_s10, %s22_s10 }
   0x5   :  { %p187_p0 = scmp.ne.s32.totalorder %s22_s10, %s186_s11  ;;  %p192_p2 = scmp.lt.s32.totalorder %s186_s11, %s186_s11 }
   0x7   :  { %p193_p3 = por %p192_p2, %p191_p1 }
   0x9   :  { %p194_p4 = pnand %p193_p3, %p187_p0 }
   0xb   :  { %197 = shalt.err (!%p194_p4)
}
   0xc   :  { %s245_s12 = smov 128   ;;  %s246_s13 = smov 8  }
   0xd   :  { %27 = dma.hbm_to_vmem [thread:$0]  %s274_s0, 256, %s22_s10, [#allocation4], %s245_s12, %s245_s12, %s246_s13  }
   0xe   :  { %s247_s16 = smov [#allocation6]  }
   0xf   :  { %s39_s17 = sshll.u32 %s247_s16, 4  ;;  %s40_s17 = int_to_ptr.vmem [resolvable:$true] %s39_s17 }
  0x10   :  { %s206_s18 = scalar_lea.vmem %s40_s17, 256  ;;  %p211_p6 = scmp.lt.s32.totalorder %s40_s17, %s40_s17 }
  0x11   :  { %p207_p5 = scmp.ne.s32.totalorder %s40_s17, %s206_s18  ;;  %p212_p7 = scmp.lt.s32.totalorder %s206_s18, %s206_s18 }
  0x13   :  { %p213_p8 = por %p212_p7, %p211_p6 }
  0x15   :  { %p214_p9 = pnand %p213_p8, %p207_p5 }
  0x17   :  { %217 = shalt.err (!%p214_p9)
}
  0x18   :  { %45 = dma.hbm_to_vmem [thread:$0]  %s275_s1, 256, %s40_s17, [#allocation7], %s245_s12, %s245_s12, %s246_s13  }
  0x19   :  { %238 = dma.done.wait [#allocation4], 256  }
  0x1a   :  { %239 = vsyncadd [#allocation4], 4294967040 }
  0x1b   :  { %240 = dma.done.wait [#allocation7], 256  }
  0x1c   :  { %241 = vsyncadd [#allocation7], 4294967040  ;;  %v248_v0 = vmov 0.0   ;;  %v65_v1 = vld [vmem:[#allocation3] sm:$0xff]  ;;  %v66_v2 = vld [vmem:[#allocation3 + $0x8] sm:$0xff]  ;;  %v109_v33 = vlaneseq  ;;  %s249_s0 = smov [#allocation8]  }
  0x1d   :  { %64 = vst [vmem:[#allocation2] sm:$0x1] %v248_v0  ;;  %166 = vlog2.f32 %v65_v1  ;;  %v75_v3 = vsub.f32 1.0, %v65_v1  ;;  %v76_v4 = vsub.f32 1.0, %v66_v2  ;;  %v67_v6 = vld [vmem:[#allocation6] sm:$0xff]  ;;  %v68_v8 = vld [vmem:[#allocation6 + $0x8] sm:$0xff] }
  0x1e   :  { %168 = vlog2.f32 %v66_v2  ;;  %v85_v15 = vsub.f32 1.0, %v67_v6  ;;  %v86_v18 = vsub.f32 1.0, %v68_v8  ;;  %v110_v34 = vshrl.u32 %v109_v33, 7  ;;  %s146_s1 = sshll.u32 %s249_s0, 4  ;;  %s147_s1 = int_to_ptr.vmem [resolvable:$true] %s146_s1 }
  0x1f   :  { %170 = vlog2.f32 %v75_v3  ;;  %v113_v36 = vand.u32 127, %v109_v33  ;;  %s218_s21 = scalar_lea.vmem %s147_s1, 16  ;;  %s222_s22 = scalar_lea.vmem %s147_s1, 32 }
  0x20   :  { %172 = vlog2.f32 %v76_v4  ;;  %v111_v35 = vadd.s32 8, %v110_v34  ;;  %v117_v37 = vmul.u32 128, %v110_v34  ;;  %p219_p10 = scmp.ne.s32.totalorder %s147_s1, %s218_s21  ;;  %p223_p11 = scmp.lt.s32.totalorder %s147_s1, %s147_s1 }
  0x21   :  { %p224_p12 = scmp.lt.s32.totalorder %s222_s22, %s218_s21 }
  0x22   :  { %v118_v38 = vmul.u32 128, %v111_v35  ;;  %v119_v43 = vadd.s32 %v117_v37, %v113_v36 }
  0x23   :  { %p225_p13 = por %p224_p12, %p223_p11 }
  0x24   :  { %v120_v45 = vadd.s32 %v118_v38, %v113_v36  ;;  %vm121_vm0 = vcmp.lt.s32.totalorder %v119_v43, 2048  ;;  %v125_v59 = vld [vmem:[#allocation2] sm:$0x1] }
  0x25   :  { %p226_p0 = pnand %p225_p13, %p219_p10 }
  0x26   :  { %vm122_vm1 = vcmp.lt.s32.totalorder %v120_v45, 2048 }
  0x2a   :  { %v167_v5 = vpop.eup %166 }
  0x2b   :  { %v169_v7 = vpop.eup %168  ;;  %v70_v9 = vmul.f32 0.6931472, %v167_v5 }
  0x2c   :  { %v171_v10 = vpop.eup %170  ;;  %v72_v11 = vmul.f32 0.6931472, %v169_v7 }
  0x2d   :  { %v173_v12 = vpop.eup %172  ;;  %v73_v13 = vmax.f32 %v70_v9, -100.0  ;;  %v78_v14 = vmul.f32 0.6931472, %v171_v10 }
  0x2e   :  { %v74_v16 = vmax.f32 %v72_v11, -100.0  ;;  %v80_v17 = vmul.f32 0.6931472, %v173_v12 }
  0x2f   :  { %v81_v19 = vmax.f32 %v78_v14, -100.0  ;;  %v83_v20 = vmul.f32 %v73_v13, %v67_v6 }
  0x30   :  { %v82_v21 = vmax.f32 %v80_v17, -100.0  ;;  %v84_v22 = vmul.f32 %v74_v16, %v68_v8 }
  0x31   :  { %v87_v23 = vmul.f32 %v85_v15, %v81_v19 }
  0x32   :  { %v88_v24 = vmul.f32 %v86_v18, %v82_v21 }
  0x33   :  { %v89_v25 = vadd.f32 %v87_v23, %v83_v20 }
  0x34   :  { %v90_v26 = vadd.f32 %v88_v24, %v84_v22 }
  0x35   :  { %v91_v27 = vsub.f32 0.0, %v89_v25 }
  0x36   :  { %v92_v28 = vsub.f32 0.0, %v90_v26 }
  0x37   :  { %v93_v29 = vsub.f32 0.0, %v91_v27 }
  0x38   :  { %v94_v30 = vsub.f32 0.0, %v92_v28 }
  0x39   :  { %v95_v31 = vmul.f32 1.442695, %v93_v29 }
  0x3a   :  { %v97_v32 = vmul.f32 1.442695, %v94_v30 }
  0x3b   :  { %174 = vpow2.f32 %v95_v31 }
  0x3c   :  { %176 = vpow2.f32 %v97_v32 }
  0x48   :  { %v175_v39 = vpop.eup %174 }
  0x49   :  { %v177_v40 = vpop.eup %176  ;;  %v99_v41 = vsub.f32 1.0, %v175_v39 }
  0x4a   :  { %v100_v42 = vsub.f32 1.0, %v177_v40 }
  0x4b   :  { %v101_v44 = vmax.f32 %v99_v41, 0.0 }
  0x4c   :  { %v102_v46 = vmax.f32 %v100_v42, 0.0 }
  0x4d   :  { %v103_v47 = vmul.f32 %v101_v44, %v101_v44 }
  0x4e   :  { %v104_v48 = vmul.f32 %v102_v46, %v102_v46 }
  0x4f   :  { %v105_v49 = vmul.f32 %v103_v47, %v91_v27 }
  0x50   :  { %v106_v50 = vmul.f32 %v104_v48, %v92_v28 }
  0x51   :  { %v123_v51 = vsel %vm121_vm0, %v105_v49, 0.0 }
  0x52   :  { %v124_v52 = vsel %vm122_vm1, %v106_v50, 0.0 }
  0x53   :  { %v126_v53 = vadd.f32 %v124_v52, %v123_v51 }
  0x55   :  { %v127_v54 = vrot.slane %v126_v53, 4 }
  0x57   :  { %v128_v55 = vadd.f32 %v127_v54, %v126_v53 }
  0x59   :  { %v129_v56 = vrot.slane %v128_v55, 2 }
  0x5b   :  { %v130_v57 = vadd.f32 %v129_v56, %v128_v55 }
  0x5d   :  { %v131_v58 = vrot.slane %v130_v57, 1 }
  0x5f   :  { %v132_v60 = vadd.f32 %v131_v58, %v130_v57 }
  0x61   :  { %v133_v61 = vadd.f32 %v132_v60, %v125_v59 }
  0x63   :  { %134 = vst [vmem:[#allocation2] sm:$0x1] %v133_v61 }
  0x6a   :  { %v138_v62 = vld [vmem:[#allocation2] sm:$0x1] }
  0x6b   :  { %139 = vst [vmem:[#allocation8] sm:$0x1] %v138_v62 }
  0x6c   :  { %229 = shalt.err (!%p226_p0)
}
  0x6d   :  { %149 = dma.vmem_to_hbm [thread:$0]  %s147_s1, 16, %s276_s2, [#allocation5]  }
  0x6e   :  { %242 = dma.done.wait [#allocation5], 16  }
  0x6f   :  { %243 = vsyncadd [#allocation5], 4294967280 }
  0x70   :  { %153 = vsyncpa [#allocation4], 1 }
  0x71   :  { %154 = vsyncpa [#allocation7], 1 }
  0x72   :  { %155 = vsyncpa [#allocation5], 1 }

</bundles_post_ra>
